<compile_context>
chip_gen: v5e
topology: v5e:2x2
jax: 0.10.0
libtpu: 0.0.40
codegen_flags: <defaults>
</compile_context>

<pallas_src>
import functools

import jax
import jax.numpy as jnp
from jax import lax
from jax.experimental import pallas as pl
from jax.experimental.pallas import tpu as pltpu

# ---------------- problem sizes ----------------
STATE_DIM = 13       # root_state = observation[..., :13]
HIDDEN_DIM = 32      # controller hidden width
ACTION_DIM = 4       # controller output (e.g. 4 rotor commands)

H_PAD = 128          # hidden padded 32 -> 128 (one full lane group)
CHUNK_R = 256        # rows per in-kernel compute chunk
MAX_TILE_R = 16384   # rows per grid step (input buf <= 8 MiB even at feat=128)


def _round_up(x, m):
    return ((x + m - 1) // m) * m


def _mlp_chunk(x, w1, b1, w2, b2, hidden_dtype):
    """13->32->4 tanh MLP on one row chunk (weights zero-padded to feat/128/4)."""
    h = jnp.dot(x.astype(jnp.bfloat16), w1, preferred_element_type=jnp.float32)
    h = jnp.tanh(h.astype(hidden_dtype) + b1.astype(hidden_dtype))
    a = jnp.dot(h.astype(jnp.bfloat16), w2,
                preferred_element_type=jnp.float32) + b2
    return jnp.tanh(a)


def _controller_kernel(x_ref, w1_ref, b1_ref, w2_ref, b2_ref, o_ref, *,
                       chunk, hidden_dtype):
    """One (tile_r, feat) row tile; weights/biases VMEM-resident.

    x_ref : (tile_r, feat)        f32   raw observation rows (first <=128 feats)
    w1_ref: (feat, H_PAD)         bf16  rows >= STATE_DIM zero -> folds [..., :13]
    b1_ref: (1, H_PAD)            f32
    w2_ref: (H_PAD, ACTION_DIM)   bf16
    b2_ref: (1, ACTION_DIM)       f32
    o_ref : (tile_r, ACTION_DIM)  f32

    NOTE: the last grid block may be ragged (rows % tile_r != 0).  Overhang
    rows hold garbage (possibly NaN) — safe because every row is independent
    and their writeback is clipped by Pallas.  Do NOT add cross-row
    reductions to this kernel.
    """
    n_chunks = x_ref.shape[0] // chunk
    if n_chunks == 1:
        o_ref[...] = _mlp_chunk(x_ref[...], w1_ref[...], b1_ref[...],
                                w2_ref[...], b2_ref[...], hidden_dtype)
    else:
        def body(c, carry):
            r0 = pl.multiple_of(c * chunk, chunk)
            x = x_ref[pl.ds(r0, chunk), :]
            o_ref[pl.ds(r0, chunk), :] = _mlp_chunk(
                x, w1_ref[...], b1_ref[...], w2_ref[...], b2_ref[...],
                hidden_dtype)
            return carry

        lax.fori_loop(0, n_chunks, body, 0)


def _pick_tiling(rows):
    """(tile_r, chunk): big tiles amortize the ~0.35us/grid-step overhead;
    tile is a multiple of CHUNK_R and <= ~rows/2 so both v7x TCs get work."""
    if rows <= CHUNK_R:
        t = max(8, _round_up(rows, 8))   # f32 sublane alignment
        return t, t
    half = _round_up((rows + 1) // 2, CHUNK_R)
    tile = min(MAX_TILE_R, half)
    return tile, CHUNK_R


def _hidden_dtype():
    try:
        kind = jax.devices()[0].device_kind.lower()
    except Exception:
        kind = ""
    # bf16 VPU/EUP only on v6e/v7x; keep the hidden elementwise path f32 elsewhere.
    return jnp.bfloat16 if ("v6" in kind or "v7" in kind) else jnp.float32


def _pad_params(w1, b1, w2, b2, *, feat):
    """Pad weights; w1 rows >= STATE_DIM are zero, folding the feature slice."""
    w1_p = (jnp.zeros((feat, H_PAD), jnp.bfloat16)
            .at[:STATE_DIM, :HIDDEN_DIM].set(w1.astype(jnp.bfloat16)))
    b1_p = jnp.zeros((1, H_PAD), jnp.float32).at[0, :HIDDEN_DIM].set(b1)
    w2_p = (jnp.zeros((H_PAD, ACTION_DIM), jnp.bfloat16)
            .at[:HIDDEN_DIM, :].set(w2.astype(jnp.bfloat16)))
    b2_p = b2.reshape(1, ACTION_DIM).astype(jnp.float32)
    return w1_p, b1_p, w2_p, b2_p


def _run_controller_kernel(x, w1_p, b1_p, w2_p, b2_p, *, tile_r, chunk, feat,
                           hidden_dtype):
    rows = x.shape[0]
    grid = (pl.cdiv(rows, tile_r),)       # ragged last block handled by Pallas
    kernel = functools.partial(_controller_kernel, chunk=chunk,
                               hidden_dtype=hidden_dtype)
    cost = pl.CostEstimate(
        flops=2 * rows * (STATE_DIM * HIDDEN_DIM + HIDDEN_DIM * ACTION_DIM),
        transcendentals=rows * (HIDDEN_DIM + ACTION_DIM),
        bytes_accessed=rows * (feat + ACTION_DIM) * 4
        + (feat * H_PAD + H_PAD * ACTION_DIM) * 2
        + (H_PAD + ACTION_DIM) * 4,
    )
    return pl.pallas_call(
        kernel,
        out_shape=jax.ShapeDtypeStruct((rows, ACTION_DIM), jnp.float32),
        grid_spec=pltpu.PrefetchScalarGridSpec(
            num_scalar_prefetch=0,
            grid=grid,
            in_specs=[
                pl.BlockSpec((tile_r, feat), lambda i: (i, 0)),       # row tiles; only first <=128 feats DMA'd
                pl.BlockSpec((feat, H_PAD), lambda i: (0, 0)),        # resident
                pl.BlockSpec((1, H_PAD), lambda i: (0, 0)),           # resident
                pl.BlockSpec((H_PAD, ACTION_DIM), lambda i: (0, 0)),  # resident
                pl.BlockSpec((1, ACTION_DIM), lambda i: (0, 0)),      # resident
            ],
            out_specs=pl.BlockSpec((tile_r, ACTION_DIM), lambda i: (i, 0)),
        ),
        compiler_params=pltpu.CompilerParams(
            dimension_semantics=("parallel",),   # shard row tiles over v7x's 2 TCs
            vmem_limit_bytes=32 * 1024 * 1024,   # worst-case live ~18 MiB (feat=128, tile=16K)
        ),
        cost_estimate=cost,
    )(x, w1_p, b1_p, w2_p, b2_p)


@jax.jit
def _forward_impl(obs, w1, b1, w2, b2):
    """obs: [B, A, obs_dim] f32 -> action [B, A, ACTION_DIM] f32."""
    B, A, obs_dim = obs.shape
    assert obs_dim >= STATE_DIM
    rows = B * A
    feat = min(obs_dim, H_PAD)            # only the first <=128 features are ever read
    x = obs.reshape(rows, obs_dim)        # collapse leading dims (no pad, no copy)

    w1_p, b1_p, w2_p, b2_p = _pad_params(w1, b1, w2, b2, feat=feat)
    tile_r, chunk = _pick_tiling(rows)
    out = _run_controller_kernel(x, w1_p, b1_p, w2_p, b2_p,
                                 tile_r=tile_r, chunk=chunk, feat=feat,
                                 hidden_dtype=_hidden_dtype())
    return out.reshape(B, A, ACTION_DIM)


def make_controller_params():
    """Deterministic synthetic controller weights (13 -> 32 -> 4 tanh MLP)."""
    k1, k2, k3, k4 = jax.random.split(jax.random.PRNGKey(42), 4)
    w1 = jax.random.normal(k1, (STATE_DIM, HIDDEN_DIM), jnp.float32) * 0.1
    b1 = jax.random.normal(k2, (HIDDEN_DIM,), jnp.float32) * 0.01
    w2 = jax.random.normal(k3, (HIDDEN_DIM, ACTION_DIM), jnp.float32) * 0.1
    b2 = jax.random.normal(k4, (ACTION_DIM,), jnp.float32) * 0.01
    return w1, b1, w2, b2


def controller_wrapper_forward(tensordict, params):
    """JAX equivalent of ControllerWrapper.forward.

    tensordict: dict with key ('agents','observation') -> [B, A, obs_dim] f32
    returns the same dict with ('agents','action') -> [B, A, ACTION_DIM] set.
    """
    obs = tensordict[("agents", "observation")]
    w1, b1, w2, b2 = params
    action = _forward_impl(obs, w1, b1, w2, b2)

    # TODO(synk): TensorDict get/set plumbing has no Pallas equivalent; plain dict used.
    out_td = dict(tensordict)
    out_td[("agents", "action")] = action
    return out_td


def _reference_forward(tensordict, params):
    """Pure-JAX f32 reference for correctness checking."""
    w1, b1, w2, b2 = params
    obs = tensordict[("agents", "observation")]
    state = obs[..., :STATE_DIM]
    h = jnp.tanh(state @ w1 + b1)
    return jnp.tanh(h @ w2 + b2)


if __name__ == "__main__":
    # small shapes: batch=2 envs, agents=4, obs_dim=32 (>= 13)
    key = jax.random.PRNGKey(0)
    obs = jax.random.normal(key, (2, 4, 32), jnp.float32)

    tensordict = {("agents", "observation"): obs}
    params = make_controller_params()

    out_td = controller_wrapper_forward(tensordict, params)
    action = jax.block_until_ready(out_td[("agents", "action")])

    ref = _reference_forward(tensordict, params)
    assert action.shape == (2, 4, ACTION_DIM)
    # bf16 MXU operands (and bf16 hidden on v6e/v7x) -> loosened tolerance.
    assert jnp.allclose(action, ref, atol=2e-2, rtol=2e-2), (
        float(jnp.max(jnp.abs(action - ref))))

    print("KERNEL_OK")
</pallas_src>

<mosaic_0001>
module attributes {stable_mosaic.version = 11 : i64} {
  func.func @_controller_kernel(%arg0: i32, %arg1: memref<8x32xf32, #tpu.memory_space<vmem>>, %arg2: memref<32x128xbf16, #tpu.memory_space<vmem>>, %arg3: memref<1x128xf32, #tpu.memory_space<vmem>>, %arg4: memref<128x4xbf16, #tpu.memory_space<vmem>>, %arg5: memref<1x4xf32, #tpu.memory_space<vmem>>, %arg6: memref<8x4xf32, #tpu.memory_space<vmem>>) attributes {dimension_semantics = [#tpu.dimension_semantics<parallel>], iteration_bounds = array<i64: 1>, scalar_prefetch = 0 : i64, scratch_operands = 0 : i64, tpu.core_type = #tpu.core_type<tc>, window_params = [{transform_indices = @transform_0, window_bounds = array<i64: 8, 32>}, {pipeline_mode = #tpu.pipeline_mode<synchronous>, transform_indices = @transform_1, window_bounds = array<i64: 32, 128>}, {pipeline_mode = #tpu.pipeline_mode<synchronous>, transform_indices = @transform_2, window_bounds = array<i64: 1, 128>}, {pipeline_mode = #tpu.pipeline_mode<synchronous>, transform_indices = @transform_3, window_bounds = array<i64: 128, 4>}, {pipeline_mode = #tpu.pipeline_mode<synchronous>, transform_indices = @transform_4, window_bounds = array<i64: 1, 4>}, {transform_indices = @transform_5, window_bounds = array<i64: 8, 4>}]} {
    %c0 = arith.constant 0 : index
    %c0_0 = arith.constant 0 : index
    %0 = vector.load %arg1[%c0, %c0_0] : memref<8x32xf32, #tpu.memory_space<vmem>>, vector<8x32xf32>
    %c0_1 = arith.constant 0 : index
    %c0_2 = arith.constant 0 : index
    %1 = vector.load %arg2[%c0_1, %c0_2] : memref<32x128xbf16, #tpu.memory_space<vmem>>, vector<32x128xbf16>
    %c0_3 = arith.constant 0 : index
    %c0_4 = arith.constant 0 : index
    %2 = vector.load %arg3[%c0_3, %c0_4] : memref<1x128xf32, #tpu.memory_space<vmem>>, vector<1x128xf32>
    %c0_5 = arith.constant 0 : index
    %c0_6 = arith.constant 0 : index
    %3 = vector.load %arg4[%c0_5, %c0_6] : memref<128x4xbf16, #tpu.memory_space<vmem>>, vector<128x4xbf16>
    %c0_7 = arith.constant 0 : index
    %c0_8 = arith.constant 0 : index
    %4 = vector.load %arg5[%c0_7, %c0_8] : memref<1x4xf32, #tpu.memory_space<vmem>>, vector<1x4xf32>
    %5 = arith.truncf %0 : vector<8x32xf32> to vector<8x32xbf16>
    %cst = arith.constant dense<0.000000e+00> : vector<8x128xf32>
    %6 = tpu.matmul %5, %1, %cst {dimension_numbers = #tpu.dot_dimension_numbers<[1], [0], [0], [1], [0, 0, 1, 1], [], []>} : vector<8x32xbf16>, vector<32x128xbf16>, vector<8x128xf32> -> vector<8x128xf32>
    %7 = vector.broadcast %2 : vector<1x128xf32> to vector<8x128xf32>
    %8 = arith.addf %6, %7 : vector<8x128xf32>
    %9 = math.tanh %8 : vector<8x128xf32>
    %10 = arith.truncf %9 : vector<8x128xf32> to vector<8x128xbf16>
    %cst_9 = arith.constant dense<0.000000e+00> : vector<8x4xf32>
    %11 = tpu.matmul %10, %3, %cst_9 {dimension_numbers = #tpu.dot_dimension_numbers<[1], [0], [0], [1], [0, 0, 1, 1], [], []>} : vector<8x128xbf16>, vector<128x4xbf16>, vector<8x4xf32> -> vector<8x4xf32>
    %12 = vector.broadcast %4 : vector<1x4xf32> to vector<8x4xf32>
    %13 = arith.addf %11, %12 : vector<8x4xf32>
    %14 = math.tanh %13 : vector<8x4xf32>
    %c0_10 = arith.constant 0 : index
    %c0_11 = arith.constant 0 : index
    %15 = vector.load %arg6[%c0_10, %c0_11] : memref<8x4xf32, #tpu.memory_space<vmem>>, vector<8x4xf32>
    tpu.vector_store %arg6[%c0_10, %c0_11], %14 {strides = array<i32>} : memref<8x4xf32, #tpu.memory_space<vmem>>, vector<8x4xf32>,
    return
  }
  func.func @transform_0(%arg0: i32) -> (i32, i32) {
    %c0_i32 = arith.constant 0 : i32
    %c0_i32_0 = arith.constant 0 : i32
    return %arg0, %c0_i32 : i32, i32
  }
  func.func @transform_1(%arg0: i32) -> (i32, i32) {
    %c0_i32 = arith.constant 0 : i32
    %c0_i32_0 = arith.constant 0 : i32
    %c0_i32_1 = arith.constant 0 : i32
    return %c0_i32, %c0_i32_0 : i32, i32
  }
  func.func @transform_2(%arg0: i32) -> (i32, i32) {
    %c0_i32 = arith.constant 0 : i32
    %c0_i32_0 = arith.constant 0 : i32
    %c0_i32_1 = arith.constant 0 : i32
    return %c0_i32, %c0_i32_0 : i32, i32
  }
  func.func @transform_3(%arg0: i32) -> (i32, i32) {
    %c0_i32 = arith.constant 0 : i32
    %c0_i32_0 = arith.constant 0 : i32
    %c0_i32_1 = arith.constant 0 : i32
    return %c0_i32, %c0_i32_0 : i32, i32
  }
  func.func @transform_4(%arg0: i32) -> (i32, i32) {
    %c0_i32 = arith.constant 0 : i32
    %c0_i32_0 = arith.constant 0 : i32
    %c0_i32_1 = arith.constant 0 : i32
    return %c0_i32, %c0_i32_0 : i32, i32
  }
  func.func @transform_5(%arg0: i32) -> (i32, i32) {
    %c0_i32 = arith.constant 0 : i32
    %c0_i32_0 = arith.constant 0 : i32
    return %arg0, %c0_i32 : i32, i32
  }
}

</mosaic_0001>

<bundles_post_ra>
// kernel: _forward_impl.1
= control target key start
LH: loop header
LB: loop body
LE: loop exit
PB: predicated region body
PF: predicated region fallthrough
CT: control target
= control target key end

     0   :  { %s320_s0 = inlined_call_operand.vmem [shape: f32[8,32], index: 0, kind: input, shape index: {}]   ;;  %s321_s1 = inlined_call_operand.vmem [shape: bf16[32,128], index: 1, kind: input, shape index: {}]   ;;  %s322_s2 = inlined_call_operand.vmem [shape: f32[1,128], index: 2, kind: input, shape index: {}]   ;;  %s323_s3 = inlined_call_operand.vmem [shape: bf16[128,4], index: 3, kind: input, shape index: {}]   ;;  %s324_s4 = inlined_call_operand.vmem [shape: f32[1,4], index: 4, kind: input, shape index: {}]   ;;  %s325_s5 = inlined_call_operand.hbm [shape: f32[8,4], index: 5, kind: output, shape index: {}]  }
   0x1   :  { %v205_v0 = vld [vmem:[%s321_s1 + $0x8] sm:$0xff]  ;;  %v213_v1 = vld [vmem:[%s323_s3 + $0x38] sm:$0xff]  ;;  %v204_v2 = vld [vmem:[%s321_s1] sm:$0xff] }
   0x2   :  { %71 = vmatpush.bf16.msra.mxu0 %v205_v0  ;;  %v22_v3 = vld [vmem:[%s320_s0] sm:$0xff]  ;;  %131 = vmatpush.bf16.msra.mxu1 %v213_v1  ;;  %v212_v4 = vld [vmem:[%s323_s3 + $0x30] sm:$0xff] }
   0x3   :  { %10 = vsyncpa [#allocation3], 0  ;;  %v45_v5 = vpack.c.bf16 %v22_v3, %v22_v3  ;;  %vm61_vm0 = vcmask 261120   ;;  %v211_v6 = vld [vmem:[%s323_s3 + $0x28] sm:$0xff]  ;;  %v210_v7 = vld [vmem:[%s323_s3 + $0x20] sm:$0xff]  ;;  %vm145_vm1 = vcmask 31744  }
   0x4   :  { %v209_v8 = vld [vmem:[%s323_s3 + $0x18] sm:$0xff]  ;;  %v208_v9 = vld [vmem:[%s323_s3 + $0x10] sm:$0xff]  ;;  %v207_v10 = vld [vmem:[%s323_s3 + $0x8] sm:$0xff] }
   0x5   :  { %v206_v11 = vld [vmem:[%s323_s3] sm:$0xff]  ;;  %s247_s3 = smov [#allocation2]  }
   0x6   :  { %72 = vmatpush.bf16.msra.mxu0 %v204_v2  ;;  %132 = vmatpush.bf16.msra.mxu1 %v212_v4  ;;  %v215_v12 = vld [vmem:[%s322_s2] ss:$0 sm:$0xff]  ;;  %s152_s17 = sshll.u32 %s247_s3, 4  ;;  %s154_s2 = sshll.u32 %s325_s5, 4  ;;  %s153_s17 = int_to_ptr.vmem [resolvable:$true] %s152_s17  ;;  %s155_s2 = int_to_ptr.hbm [resolvable:$true] %s154_s2 }
   0x7   :  { %v216_v18 = vld [vmem:[%s324_s4] ss:$0 sm:$0xff] }
   0x9   :  { %171 = vmatmul.msk.bf16.vlgmr.msra.gmra.mxu0 %vm61_vm0, %v45_v5 }
   0xa   :  { %133 = vmatpush.bf16.msra.mxu1 %v211_v6 }
   0xe   :  { %134 = vmatpush.bf16.msra.mxu1 %v210_v7 }
  0x12   :  { %135 = vmatpush.bf16.msra.mxu1 %v209_v8 }
  0x16   :  { %136 = vmatpush.bf16.msra.mxu1 %v208_v9 }
  0x1a   :  { %137 = vmatpush.bf16.msra.mxu1 %v207_v10 }
  0x1e   :  { %138 = vmatpush.bf16.msra.mxu1 %v206_v11 }
  0x86   :  { %v74_v13 = vpop.f32.mrf.mxu0 }
  0x87   :  { %v75_v14 = vadd.f32 %v215_v12, %v74_v13 }
  0x89   :  { %217 = vtanh.f32 %v75_v14 }
  0x8e   :  { %v76_v15 = vpop.f32.mrf.mxu0 }
  0x8f   :  { %v218_v16 = vpop.eup %217 }
  0x90   :  { %v79_v17 = vpack.c.bf16 %v218_v16, %v218_v16 }
  0x92   :  { %139 = vmatmul.bf16.vlgmr.msra.gmra.mxu1 %v79_v17 }
 0x10f   :  { %v140_v19 = vpop.f32.mrf.mxu1 }
 0x110   :  { %v141_v20 = vadd.f32 %v216_v18, %v140_v19 }
 0x112   :  { %219 = vtanh.f32 %v141_v20 }
 0x117   :  { %v142_v21 = vpop.f32.mrf.mxu1 }
 0x118   :  { %v220_v22 = vpop.eup %219 }
 0x119   :  { %146 = vst.msk [vmem:[#allocation2] sm:$0xff] %vm145_vm1, %v220_v22 }
 0x11a   :  { %157 = dma.vmem_to_hbm [thread:$0]  %s153_s17, 128, %s155_s2, [#allocation3]  }
 0x11b   :  { %245 = dma.done.wait [#allocation3], 128  }
 0x11c   :  { %246 = vsyncadd [#allocation3], 4294967168 }
 0x11d   :  { %162 = vsyncpa [#allocation3], 1 }

</bundles_post_ra>
